<compile_context>
chip_gen: v7x
topology: tpu7x:2x2x1
jax: 0.10.0
libtpu: 0.0.40
codegen_flags: <defaults>
</compile_context>

<pallas_src>
import functools
import math

import jax
import jax.numpy as jnp
from jax.experimental import pallas as pl
from jax.experimental.pallas import tpu as pltpu

_LANE = 128
_MAX_VB = 32                        # unroll cap (registers are bounded by the
                                    # scratch slab; this bounds code size only)
_VMEM_BUDGET = 48 * 1024 * 1024     # padded, double-buffered; v7x-safe (64 MiB)
_VMEM_LIMIT_CAP = 56 * 1024 * 1024  # leave headroom below v7x physical VMEM


def _round_up(x, m):
    return (x + m - 1) // m * m


def _padded_tile_bytes(rows, cols, dtype):
    """Mosaic VMEM footprint of one 2-D (rows, cols) tile: last dim pads to 128
    lanes, second-to-last to the dtype's sublane multiple (8 f32 / 16 bf16)."""
    item = jnp.dtype(dtype).itemsize
    sublane = (8 * 4) // item
    return _round_up(max(int(rows), 1), sublane) * _round_up(max(int(cols), 1), _LANE) * item


def _step_vmem_bytes(vb, B, D, T, compute_dtype):
    """Padded per-grid-step footprint; BlockSpec double-buffers inputs/outputs."""
    L = vb * T
    x_b = vb * _padded_tile_bytes(B, D, compute_dtype)     # (vb, B, D) block
    w_b = _padded_tile_bytes(D, L, compute_dtype)           # (1, D, vb*T) slab
    b_b = _padded_tile_bytes(1, L, jnp.float32)             # (1, 1, vb*T) slab
    o_b = _padded_tile_bytes(B, L, jnp.float32)             # (1, B, vb*T) slab
    acc = _padded_tile_bytes(B, L, jnp.float32)             # scratch (single buf)
    return 2 * (x_b + w_b + b_b + o_b) + acc


def _choose_vb(V, B, D, T, compute_dtype):
    """Variables per grid step.  Preference order:
      1. vb*T a multiple of 128  -> lane-dense weight slab + unmasked wide stores
      2. among those, keep >= 2 grid steps so the "parallel" grid axis can shard
         across v7x's two TensorCores (no-op on single-TC v5e/v6e)
      3. padded double-buffered footprint under the v7x-safe VMEM budget.
    Non-divisor V is handled by zero-padding in the wrapper, so any vb works."""
    cap = max(1, min(V, _MAX_VB))
    dense = [vb for vb in range(1, cap + 1) if (vb * T) % _LANE == 0]
    if dense:
        multi_step = [vb for vb in dense if (V + vb - 1) // vb >= 2]
        vb = max(multi_step) if multi_step else max(dense)
    else:
        vb = cap   # tiny V*T: the whole problem is sub-128-lane anyway
    while vb > 1 and _step_vmem_bytes(vb, B, D, T, compute_dtype) > _VMEM_BUDGET:
        vb = max(1, vb // 2)
    return vb


def _mv_dense_kernel(x_ref, w_ref, b_ref, o_ref, acc_ref, *,
                     activation_type, vb, t_out, bias_scale):
    # x_ref: (vb, B, D)   natural per-variable LHS tiles
    # w_ref: (1, D, vb*T) lane-dense packed weight slab
    # b_ref: (1, 1, vb*T) lane-dense packed bias slab (f32)
    # o_ref: (1, B, vb*T) lane-dense packed output slab (f32)
    # acc_ref: (B, vb*T)  f32 VMEM scratch -- bounds live values to one slab.
    w = w_ref[0]                                       # (D, vb*T), one dense load
    for v in range(vb):                                # static unroll, vb <= 32
        lo = v * t_out
        acc_ref[:, lo:lo + t_out] = jnp.dot(
            x_ref[v], w[:, lo:lo + t_out],             # (B, D) @ (D, T) on MXU
            preferred_element_type=jnp.float32)
    # One dense epilogue over the packed slab.  The bias is scaled by D because
    # the reference adds it BEFORE the sum over the D axis (intentional).
    out = acc_ref[...] + jnp.float32(bias_scale) * b_ref[0]
    if activation_type == "softplus":
        # Numerically stable softplus with ops that lower cleanly in Mosaic.
        out = jnp.maximum(out, 0.0) + jnp.log(1.0 + jnp.exp(-jnp.abs(out)))
    o_ref[0] = out.astype(o_ref.dtype)


def mv_dense_forward(x, dense_w, dense_bias, activation_type="",
                     compute_dtype=jnp.bfloat16, return_packed=False):
    """x: [V,B,D]; dense_w: [V,1,D,T]; dense_bias: [V,1,1,T] -> [V,B,T] float32.

    compute_dtype=bf16 (default) halves x/W HBM traffic and uses the native bf16
    MXU path on v5e/v6e/v7x; accumulation is f32.  Pass jnp.float32 when tight
    parity with an f32 reference is required (bf16 needs ~5e-2 tolerances).
    """
    if activation_type not in ("", "softplus"):
        raise ValueError(f"unsupported activation_type: {activation_type!r}")
    V, B, D = x.shape
    T = dense_w.shape[-1]

    vb = _choose_vb(V, B, D, T, compute_dtype)
    g = (V + vb - 1) // vb
    Vp = g * vb
    L = vb * T

    # ---- one-time wrapper-side packing (pure XLA layout work) ---------------
    #   w_packed[i, d, v*T + t] = W[i*vb + v, 0, d, t]
    #   b_packed[i, 0, v*T + t] = bias[i*vb + v, 0, 0, t]
    w3 = dense_w.reshape(V, D, T)
    b2 = dense_bias.reshape(V, T).astype(jnp.float32)
    xp = x
    if Vp != V:  # pad awkward V with zero variables (masked off after unpack)
        xp = jnp.pad(xp, ((0, Vp - V), (0, 0), (0, 0)))
        w3 = jnp.pad(w3, ((0, Vp - V), (0, 0), (0, 0)))
        b2 = jnp.pad(b2, ((0, Vp - V), (0, 0)))
    xp = xp.astype(compute_dtype)
    w_packed = (w3.astype(compute_dtype)
                .reshape(g, vb, D, T).transpose(0, 2, 1, 3).reshape(g, D, L))
    b_packed = b2.reshape(g, 1, L)

    step_bytes = _step_vmem_bytes(vb, B, D, T, compute_dtype)
    vmem_limit = min(_VMEM_LIMIT_CAP, max(16 * 1024 * 1024, step_bytes + (4 << 20)))

    kernel = functools.partial(_mv_dense_kernel, activation_type=activation_type,
                               vb=vb, t_out=T, bias_scale=float(D))

    out_packed = pl.pallas_call(
        kernel,
        out_shape=jax.ShapeDtypeStruct((g, B, L), jnp.float32),
        grid_spec=pltpu.PrefetchScalarGridSpec(
            num_scalar_prefetch=0,
            grid=(g,),
            in_specs=[
                pl.BlockSpec((vb, B, D), lambda i: (i, 0, 0)),
                pl.BlockSpec((1, D, L), lambda i: (i, 0, 0)),
                pl.BlockSpec((1, 1, L), lambda i: (i, 0, 0)),
            ],
            out_specs=pl.BlockSpec((1, B, L), lambda i: (i, 0, 0)),
            scratch_shapes=[pltpu.VMEM((B, L), jnp.float32)],
        ),
        compiler_params=pltpu.CompilerParams(
            # "parallel" shards a multi-step grid across v7x's two TensorCores;
            # measured no-op on single-TC v5e/v6e (harmless there).
            dimension_semantics=("parallel",),
            vmem_limit_bytes=vmem_limit,
        ),
    )(xp, w_packed, b_packed)

    if return_packed:
        # Let the consumer fuse the unpack and skip one output-sized HBM round
        # trip: layout is out_packed[i, b, v*T + t] == out[i*vb + v, b, t].
        return out_packed, (g, vb, T)

    out = (out_packed.reshape(g, B, vb, T).transpose(0, 2, 1, 3)
           .reshape(Vp, B, T))[:V]
    return out


def multi_mv_dense_forward(x, dense_w, dense_bias, num_layer, dim_vari,
                           activation_type="", compute_dtype=jnp.bfloat16):
    """Faithful to multi_mv_dense.forward: every iteration applies dropout to the
    ORIGINAL input followed by the single shared mv_dense layer (the reference
    never chains layer outputs), so with dropout == identity at inference every
    iteration produces the same h.  Compute it once and only iterate the dim
    bookkeeping (num_layer x fewer pallas_call launches / HBM passes)."""
    # TODO(synk): training-mode dropout (PRNG masking inside the kernel) is not
    # implemented; nn.Dropout is identity at inference.
    in_dim, out_dim = dim_vari, dim_vari // 2
    h = None
    if num_layer > 0:
        h = mv_dense_forward(x, dense_w, dense_bias, activation_type,
                             compute_dtype=compute_dtype)
    for _ in range(num_layer):
        in_dim, out_dim = out_dim, out_dim // 2
    return h, in_dim


def init_mv_dense_params(key, dim_per_vari, num_vari, dim_to):
    """Deterministic init following reset_parameters(): uniform(-std, std)."""
    std = 1.0 / math.sqrt(num_vari)
    kw, kb = jax.random.split(key)
    dense_w = jax.random.uniform(
        kw, (num_vari, 1, 2 * dim_per_vari, dim_to),
        minval=-std, maxval=std, dtype=jnp.float32)
    dense_bias = jax.random.uniform(
        kb, (num_vari, 1, 1, dim_to),
        minval=-std, maxval=std, dtype=jnp.float32)
    return dense_w, dense_bias


if __name__ == "__main__":
    # multi_mv_dense implies: dense = mv_dense(dim_vari, num_vari, dim_vari // 2)
    # so D = 2*dim_vari and T = dim_vari // 2.
    dim_vari, num_vari, batch, num_layer = 16, 4, 8, 2
    D, T = 2 * dim_vari, dim_vari // 2            # 32, 8

    key = jax.random.PRNGKey(0)
    kx, kp, kx2, kp2 = jax.random.split(key, 4)
    x = jax.random.normal(kx, (num_vari, batch, D), dtype=jnp.float32)
    dense_w, dense_bias = init_mv_dense_params(kp, dim_vari, num_vari, T)

    # f32 compute: tight parity with the f32 reference broadcast semantics.
    out, out_dim = multi_mv_dense_forward(x, dense_w, dense_bias, num_layer,
                                          dim_vari, activation_type="",
                                          compute_dtype=jnp.float32)
    out = jax.block_until_ready(out)
    ref = (x[..., None] * dense_w + dense_bias).sum(axis=2)
    assert out.shape == (num_vari, batch, T)
    assert out_dim == dim_vari // (2 ** num_layer)
    assert jnp.allclose(out, ref, atol=1e-4, rtol=1e-4), "mv_dense f32 mismatch"

    # Softplus activation path.
    out_sp = jax.block_until_ready(
        mv_dense_forward(x, dense_w, dense_bias, "softplus",
                         compute_dtype=jnp.float32))
    assert jnp.allclose(out_sp, jax.nn.softplus(ref), atol=1e-4, rtol=1e-4), \
        "softplus mismatch"

    # Default bf16 compute path (halved x/W traffic); loose tolerances expected.
    out_bf16 = jax.block_until_ready(mv_dense_forward(x, dense_w, dense_bias, ""))
    assert jnp.allclose(out_bf16, ref, atol=5e-2, rtol=5e-2), "bf16 mismatch"

    # Lane-dense, multi-step case: vb*T = 128 and grid=(2,) ("parallel" axis
    # shards the two steps across v7x's two TensorCores).
    V2, B2, dpv2, T2 = 8, 8, 16, 32
    D2 = 2 * dpv2
    x2 = jax.random.normal(kx2, (V2, B2, D2), dtype=jnp.float32)
    w2, b2 = init_mv_dense_params(kp2, dpv2, V2, T2)
    out2 = jax.block_until_ready(
        mv_dense_forward(x2, w2, b2, "", compute_dtype=jnp.float32))
    ref2 = (x2[..., None] * w2 + b2).sum(axis=2)
    assert jnp.allclose(out2, ref2, atol=1e-4, rtol=1e-4), "case-2 mismatch"

    # Awkward (non-divisor) V exercises the zero-padding path (V=5 -> Vp=8).
    V3 = 5
    x3 = jax.random.normal(kx, (V3, B2, D2), dtype=jnp.float32)
    w_c3, b_c3 = init_mv_dense_params(kp2, dpv2, V3, T2)
    out3 = jax.block_until_ready(
        mv_dense_forward(x3, w_c3, b_c3, "", compute_dtype=jnp.float32))
    ref3 = (x3[..., None] * w_c3 + b_c3).sum(axis=2)
    assert jnp.allclose(out3, ref3, atol=1e-4, rtol=1e-4), "case-3 (padded V) mismatch"

    print("KERNEL_OK")
</pallas_src>

<mosaic_0001>
module attributes {stable_mosaic.version = 11 : i64} {
  func.func @_mv_dense_kernel(%arg0: i32, %arg1: memref<4x8x32xf32, #tpu.memory_space<vmem>>, %arg2: memref<1x32x32xf32, #tpu.memory_space<vmem>>, %arg3: memref<1x1x32xf32, #tpu.memory_space<vmem>>, %arg4: memref<1x8x32xf32, #tpu.memory_space<vmem>>, %arg5: memref<8x32xf32, #tpu.memory_space<vmem>>) attributes {dimension_semantics = [#tpu.dimension_semantics<parallel>], iteration_bounds = array<i64: 1>, scalar_prefetch = 0 : i64, scratch_operands = 1 : i64, tpu.core_type = #tpu.core_type<tc>, window_params = [{transform_indices = @transform_0, window_bounds = array<i64: 4, 8, 32>}, {transform_indices = @transform_1, window_bounds = array<i64: 1, 32, 32>}, {transform_indices = @transform_2, window_bounds = array<i64: 1, 1, 32>}, {transform_indices = @transform_3, window_bounds = array<i64: 1, 8, 32>}]} {
    %c0 = arith.constant 0 : index
    %c0_0 = arith.constant 0 : index
    %c0_1 = arith.constant 0 : index
    %0 = vector.load %arg2[%c0, %c0_0, %c0_1] : memref<1x32x32xf32, #tpu.memory_space<vmem>>, vector<1x32x32xf32>
    %1 = vector.shape_cast %0 : vector<1x32x32xf32> to vector<32x32xf32>
    %c0_2 = arith.constant 0 : index
    %c0_3 = arith.constant 0 : index
    %c0_4 = arith.constant 0 : index
    %2 = vector.load %arg1[%c0_2, %c0_3, %c0_4] : memref<4x8x32xf32, #tpu.memory_space<vmem>>, vector<1x8x32xf32>
    %3 = vector.shape_cast %2 : vector<1x8x32xf32> to vector<8x32xf32>
    %4 = vector.extract_strided_slice %1 {offsets = [0, 0], sizes = [32, 8], strides = [1, 1]} : vector<32x32xf32> to vector<32x8xf32>
    %cst = arith.constant dense<0.000000e+00> : vector<8x8xf32>
    %5 = tpu.matmul %3, %4, %cst {dimension_numbers = #tpu.dot_dimension_numbers<[1], [0], [0], [1], [0, 0, 1, 1], [], []>} : vector<8x32xf32>, vector<32x8xf32>, vector<8x8xf32> -> vector<8x8xf32>
    %c0_5 = arith.constant 0 : index
    %c0_6 = arith.constant 0 : index
    %6 = vector.load %arg5[%c0_5, %c0_6] : memref<8x32xf32, #tpu.memory_space<vmem>>, vector<8x8xf32>
    tpu.vector_store %arg5[%c0_5, %c0_6], %5 {strides = array<i32>} : memref<8x32xf32, #tpu.memory_space<vmem>>, vector<8x8xf32>,
    %c1 = arith.constant 1 : index
    %c0_7 = arith.constant 0 : index
    %c0_8 = arith.constant 0 : index
    %7 = vector.load %arg1[%c1, %c0_7, %c0_8] : memref<4x8x32xf32, #tpu.memory_space<vmem>>, vector<1x8x32xf32>
    %8 = vector.shape_cast %7 : vector<1x8x32xf32> to vector<8x32xf32>
    %9 = vector.extract_strided_slice %1 {offsets = [0, 8], sizes = [32, 8], strides = [1, 1]} : vector<32x32xf32> to vector<32x8xf32>
    %cst_9 = arith.constant dense<0.000000e+00> : vector<8x8xf32>
    %10 = tpu.matmul %8, %9, %cst_9 {dimension_numbers = #tpu.dot_dimension_numbers<[1], [0], [0], [1], [0, 0, 1, 1], [], []>} : vector<8x32xf32>, vector<32x8xf32>, vector<8x8xf32> -> vector<8x8xf32>
    %c0_10 = arith.constant 0 : index
    %c8 = arith.constant 8 : index
    %11 = vector.load %arg5[%c0_10, %c8] : memref<8x32xf32, #tpu.memory_space<vmem>>, vector<8x8xf32>
    tpu.vector_store %arg5[%c0_10, %c8], %10 {strides = array<i32>} : memref<8x32xf32, #tpu.memory_space<vmem>>, vector<8x8xf32>,
    %c2 = arith.constant 2 : index
    %c0_11 = arith.constant 0 : index
    %c0_12 = arith.constant 0 : index
    %12 = vector.load %arg1[%c2, %c0_11, %c0_12] : memref<4x8x32xf32, #tpu.memory_space<vmem>>, vector<1x8x32xf32>
    %13 = vector.shape_cast %12 : vector<1x8x32xf32> to vector<8x32xf32>
    %14 = vector.extract_strided_slice %1 {offsets = [0, 16], sizes = [32, 8], strides = [1, 1]} : vector<32x32xf32> to vector<32x8xf32>
    %cst_13 = arith.constant dense<0.000000e+00> : vector<8x8xf32>
    %15 = tpu.matmul %13, %14, %cst_13 {dimension_numbers = #tpu.dot_dimension_numbers<[1], [0], [0], [1], [0, 0, 1, 1], [], []>} : vector<8x32xf32>, vector<32x8xf32>, vector<8x8xf32> -> vector<8x8xf32>
    %c0_14 = arith.constant 0 : index
    %c16 = arith.constant 16 : index
    %16 = vector.load %arg5[%c0_14, %c16] : memref<8x32xf32, #tpu.memory_space<vmem>>, vector<8x8xf32>
    tpu.vector_store %arg5[%c0_14, %c16], %15 {strides = array<i32>} : memref<8x32xf32, #tpu.memory_space<vmem>>, vector<8x8xf32>,
    %c3 = arith.constant 3 : index
    %c0_15 = arith.constant 0 : index
    %c0_16 = arith.constant 0 : index
    %17 = vector.load %arg1[%c3, %c0_15, %c0_16] : memref<4x8x32xf32, #tpu.memory_space<vmem>>, vector<1x8x32xf32>
    %18 = vector.shape_cast %17 : vector<1x8x32xf32> to vector<8x32xf32>
    %19 = vector.extract_strided_slice %1 {offsets = [0, 24], sizes = [32, 8], strides = [1, 1]} : vector<32x32xf32> to vector<32x8xf32>
    %cst_17 = arith.constant dense<0.000000e+00> : vector<8x8xf32>
    %20 = tpu.matmul %18, %19, %cst_17 {dimension_numbers = #tpu.dot_dimension_numbers<[1], [0], [0], [1], [0, 0, 1, 1], [], []>} : vector<8x32xf32>, vector<32x8xf32>, vector<8x8xf32> -> vector<8x8xf32>
    %c0_18 = arith.constant 0 : index
    %c24 = arith.constant 24 : index
    %21 = vector.load %arg5[%c0_18, %c24] : memref<8x32xf32, #tpu.memory_space<vmem>>, vector<8x8xf32>
    tpu.vector_store %arg5[%c0_18, %c24], %20 {strides = array<i32>} : memref<8x32xf32, #tpu.memory_space<vmem>>, vector<8x8xf32>,
    %c0_19 = arith.constant 0 : index
    %c0_20 = arith.constant 0 : index
    %22 = vector.load %arg5[%c0_19, %c0_20] : memref<8x32xf32, #tpu.memory_space<vmem>>, vector<8x32xf32>
    %c0_21 = arith.constant 0 : index
    %c0_22 = arith.constant 0 : index
    %c0_23 = arith.constant 0 : index
    %23 = vector.load %arg3[%c0_21, %c0_22, %c0_23] : memref<1x1x32xf32, #tpu.memory_space<vmem>>, vector<1x1x32xf32>
    %24 = vector.shape_cast %23 : vector<1x1x32xf32> to vector<1x32xf32>
    %cst_24 = arith.constant 3.200000e+01 : f32
    %25 = vector.broadcast %cst_24 : f32 to vector<1x32xf32>
    %26 = arith.mulf %25, %24 : vector<1x32xf32>
    %27 = vector.broadcast %26 : vector<1x32xf32> to vector<8x32xf32>
    %28 = arith.addf %22, %27 : vector<8x32xf32>
    %c0_25 = arith.constant 0 : index
    %c0_26 = arith.constant 0 : index
    %c0_27 = arith.constant 0 : index
    %29 = vector.load %arg4[%c0_25, %c0_26, %c0_27] : memref<1x8x32xf32, #tpu.memory_space<vmem>>, vector<1x8x32xf32>
    %30 = vector.shape_cast %29 : vector<1x8x32xf32> to vector<8x32xf32>
    %31 = vector.shape_cast %28 : vector<8x32xf32> to vector<1x8x32xf32>
    tpu.vector_store %arg4[%c0_25, %c0_26, %c0_27], %31 {strides = array<i32>} : memref<1x8x32xf32, #tpu.memory_space<vmem>>, vector<1x8x32xf32>,
    return
  }
  func.func @transform_0(%arg0: i32) -> (i32, i32, i32) {
    %c0_i32 = arith.constant 0 : i32
    %c0_i32_0 = arith.constant 0 : i32
    %c0_i32_1 = arith.constant 0 : i32
    return %arg0, %c0_i32, %c0_i32_0 : i32, i32, i32
  }
  func.func @transform_1(%arg0: i32) -> (i32, i32, i32) {
    %c0_i32 = arith.constant 0 : i32
    %c0_i32_0 = arith.constant 0 : i32
    %c0_i32_1 = arith.constant 0 : i32
    return %arg0, %c0_i32, %c0_i32_0 : i32, i32, i32
  }
  func.func @transform_2(%arg0: i32) -> (i32, i32, i32) {
    %c0_i32 = arith.constant 0 : i32
    %c0_i32_0 = arith.constant 0 : i32
    %c0_i32_1 = arith.constant 0 : i32
    return %arg0, %c0_i32, %c0_i32_0 : i32, i32, i32
  }
  func.func @transform_3(%arg0: i32) -> (i32, i32, i32) {
    %c0_i32 = arith.constant 0 : i32
    %c0_i32_0 = arith.constant 0 : i32
    %c0_i32_1 = arith.constant 0 : i32
    return %arg0, %c0_i32, %c0_i32_0 : i32, i32, i32
  }
}

</mosaic_0001>

<bundles_post_ra>
// kernel: tpu_custom_call.1
= control target key start
LH: loop header
LB: loop body
LE: loop exit
PB: predicated region body
PF: predicated region fallthrough
CT: control target
= control target key end

     0   :  { %8 = vsyncpa [#allocation4], 0  ;;  %s737_s0 = inlined_call_operand.hbm [shape: f32[4,8,32], index: 0, kind: input, shape index: {}]   ;;  %s738_s1 = inlined_call_operand.hbm [shape: f32[1,32,32], index: 1, kind: input, shape index: {}]   ;;  %s739_s2 = inlined_call_operand.vmem [shape: f32[1,1,32], index: 2, kind: input, shape index: {}]   ;;  %s740_s3 = inlined_call_operand.hbm [shape: f32[1,8,32], index: 3, kind: output, shape index: {}]  }
   0x1   :  { %9 = vsyncpa [#allocation7], 0 }
   0x2   :  { %10 = vsyncpa [#allocation5], 0  ;;  %s641_s12 = smov [#allocation3]   ;;  %s569_s16 = scalar_lea.hbm %s737_s0, 512 }
   0x3   :  { %s16_s13 = sshll.u32 %s641_s12, 4  ;;  %p570_p0 = scmp.ne.s32.totalorder %s737_s0, %s569_s16  ;;  %s17_s13 = int_to_ptr.vmem [resolvable:$true] %s16_s13 }
   0x4   :  { %p573_p1 = scmp.lt.u32.totalorder %s569_s16, %s737_s0 }
   0x6   :  { %p575_p2 = pnand %p573_p1, %p570_p0 }
   0x8   :  { %578 = shalt.err (!%p575_p2)
}
   0x9   :  { %s579_s21 = scalar_lea.vmem %s17_s13, 512  ;;  %p584_p4 = scmp.lt.s32.totalorder %s17_s13, %s17_s13 }
   0xa   :  { %p580_p3 = scmp.ne.s32.totalorder %s17_s13, %s579_s21  ;;  %p585_p5 = scmp.lt.s32.totalorder %s579_s21, %s579_s21 }
   0xc   :  { %p586_p6 = por %p585_p5, %p584_p4 }
   0xe   :  { %p587_p7 = pnand %p586_p6, %p580_p3 }
  0x10   :  { %590 = shalt.err (!%p587_p7)
}
  0x11   :  { %s642_s22 = smov 128   ;;  %s643_s23 = smov 8  }
  0x12   :  { %22 = dma.hbm_to_vmem [thread:$0]  %s737_s0, 512, %s17_s13, [#allocation4], %s642_s22, %s642_s22, %s643_s23  }
  0x13   :  { %s644_s26 = smov [#allocation6]   ;;  %s591_s30 = scalar_lea.hbm %s738_s1, 512 }
  0x14   :  { %s28_s27 = sshll.u32 %s644_s26, 4  ;;  %p592_p8 = scmp.ne.s32.totalorder %s738_s1, %s591_s30  ;;  %s29_s27 = int_to_ptr.vmem [resolvable:$true] %s28_s27 }
  0x15   :  { %p595_p9 = scmp.lt.u32.totalorder %s591_s30, %s738_s1 }
  0x17   :  { %p597_p10 = pnand %p595_p9, %p592_p8 }
  0x19   :  { %600 = shalt.err (!%p597_p10)
}
  0x1a   :  { %s601_s8 = scalar_lea.vmem %s29_s27, 512  ;;  %p606_p12 = scmp.lt.s32.totalorder %s29_s27, %s29_s27 }
  0x1b   :  { %p602_p11 = scmp.ne.s32.totalorder %s29_s27, %s601_s8  ;;  %p607_p13 = scmp.lt.s32.totalorder %s601_s8, %s601_s8 }
  0x1d   :  { %p608_p0 = por %p607_p13, %p606_p12 }
  0x1f   :  { %p609_p1 = pnand %p608_p0, %p602_p11 }
  0x21   :  { %612 = shalt.err (!%p609_p1)
}
  0x22   :  { %34 = dma.hbm_to_vmem [thread:$0]  %s738_s1, 512, %s29_s27, [#allocation7], %s642_s22, %s642_s22, %s643_s23  }
  0x23   :  { %635 = dma.done.wait [#allocation4], 512  }
  0x24   :  { %636 = vsyncadd [#allocation4], 4294966784 }
  0x25   :  { %637 = dma.done.wait [#allocation7], 512  }
  0x26   :  { %638 = vsyncadd [#allocation7], 4294966784  ;;  %v645_v0 = vmov 0.0|0.0   ;;  %vm646_vm0 = vmmov 0   ;;  %v647_v1 = vmov 0.0   ;;  %v43_v2 = vld [vmem:[#allocation6] sm:$0xff]  ;;  %v411_v47 = vlaneseq }
  0x27   :  { %502 = vmatprep.subr.bf16.mxu0 %v645_v0  ;;  %508 = vmatprep.subr.bf16.mxu1 %v645_v0  ;;  %v44_v3 = vld [vmem:[#allocation6 + $0x8] sm:$0xff]  ;;  %v45_v4 = vld [vmem:[#allocation6 + $0x10] sm:$0xff]  ;;  %v46_v6 = vld [vmem:[#allocation6 + $0x18] sm:$0xff]  ;;  %s648_s1 = smov 120   ;;  %s649_s10 = smov 112   ;;  %vm48_vm1 = vcmask 261120  }
  0x28   :  { %466 = vmatprep.mubr.msk.f32.mxu0 %vm646_vm0, %v647_v1  ;;  %477 = vmatprep.mubr.msk.f32.mxu1 %vm646_vm0, %v647_v1  ;;  %v539_v5 = vpack.i.bf16 %v44_v3, %v43_v2  ;;  %v503_v7 = vpack.c.bf16 %v44_v3, %v43_v2  ;;  %v544_v8 = vpack.i.bf16 %v46_v6, %v45_v4  ;;  %s650_s11 = smov 104   ;;  %v47_v10 = vld [vmem:[#allocation3] sm:$0xff]  ;;  %v125_v33 = vld [vmem:[#allocation3 + $0x8] sm:$0xff]  ;;  %v222_v36 = vld [vmem:[#allocation3 + $0x10] sm:$0xff]  ;;  %vm122_vm2 = vcmask 64512   ;;  %s651_s12 = smov 16  }
  0x29   :  { %v506_v9 = vpack.c.bf16 %v46_v6, %v45_v4  ;;  %v315_v37 = vld [vmem:[#allocation3 + $0x18] sm:$0xff]  ;;  %s652_s13 = smov 24   ;;  %vm219_vm3 = vcmask 130112   ;;  %vm312_vm4 = vcmask 195712   ;;  %v412_v49 = vshrl.u32 %v411_v47, 7  ;;  %s653_s16 = smov [#allocation8]  }
  0x2a   :  { %540 = vrot.lane.b32.xlu0 %v539_v5, %s648_s1  ;;  %550 = vrot.lane.b32.xlu1 %v539_v5, %s649_s10  ;;  %vm405_vm5 = vcmask 261312   ;;  %v408_v50 = vld [vmem:[%s739_s2] sm:$0x1]  ;;  %s424_s17 = sshll.u32 %s653_s16, 4  ;;  %s425_s17 = int_to_ptr.vmem [resolvable:$true] %s424_s17 }
  0x2b   :  { %504 = vmatpush3.bf16.msra.mxu0 %v503_v7  ;;  %v409_v52 = vmul.f32 32.0, %v408_v50  ;;  %v413_v53 = vsub.s32 0, %v412_v49  ;;  %s613_s18 = scalar_lea.vmem %s425_s17, 128  ;;  %p618_p3 = scmp.lt.s32.totalorder %s425_s17, %s425_s17 }
  0x2c   :  { %505 = vmatprep.subr.bf16.mxu0 %v645_v0  ;;  %p614_p2 = scmp.ne.s32.totalorder %s425_s17, %s613_s18  ;;  %p619_p4 = scmp.lt.s32.totalorder %s613_s18, %s613_s18 }
  0x2d   :  { %v414_v54 = vrot.slane %v409_v52, %v413_v53 }
  0x2e   :  { %545 = vrot.lane.b32.xlu0 %v544_v8, %s648_s1  ;;  %555 = vrot.lane.b32.xlu1 %v539_v5, %s650_s11  ;;  %p620_p5 = por %p619_p4, %p618_p3 }
  0x2f   :  { %507 = vmatpush3.bf16.msra.mxu0 %v506_v9 }
  0x30   :  { %514 = vmatprep.subr.bf16.mxu0 %v645_v0  ;;  %p621_p6 = pnand %p620_p5, %p614_p2 }
  0x32   :  { %560 = vrot.lane.b32.xlu0 %v544_v8, %s649_s10  ;;  %565 = vrot.lane.b32.xlu1 %v544_v8, %s650_s11 }
  0x33   :  { %467 = vmatmul.mubr.msk.f32.vlgmr.msra.gmra.mrb[0].mxu0 %vm48_vm1, %v47_v10 }
  0x34   :  { %488 = vmatprep.mubr.msk.f32.mxu0 %vm646_vm0, %v647_v1 }
  0x9c   :  { %v541_v11 = vpop.permute.xlu0 %540  ;;  %v551_v12 = vpop.permute.xlu1 %550 }
  0x9d   :  { %v543_v13 = vunpack.i.h.bf16 %v541_v11  ;;  %v542_v14 = vunpack.i.l.bf16 %v541_v11  ;;  %v553_v15 = vunpack.i.h.bf16 %v551_v12  ;;  %v552_v16 = vunpack.i.l.bf16 %v551_v12 }
  0x9f   :  { %v515_v17 = vpack.c.bf16 %v553_v15, %v552_v16  ;;  %v509_v18 = vpack.c.bf16 %v543_v13, %v542_v14 }
  0xa0   :  { %v546_v19 = vpop.permute.xlu0 %545  ;;  %v556_v20 = vpop.permute.xlu1 %555 }
  0xa1   :  { %v548_v21 = vunpack.i.h.bf16 %v546_v19  ;;  %v547_v22 = vunpack.i.l.bf16 %v546_v19  ;;  %510 = vmatpush3.bf16.msra.mxu1 %v509_v18  ;;  %v558_v23 = vunpack.i.h.bf16 %v556_v20  ;;  %v557_v24 = vunpack.i.l.bf16 %v556_v20  ;;  %516 = vmatpush3.bf16.msra.mxu0 %v515_v17 }
  0xa2   :  { %511 = vmatprep.subr.bf16.mxu1 %v645_v0  ;;  %517 = vmatprep.subr.bf16.mxu0 %v645_v0 }
  0xa3   :  { %v512_v25 = vpack.c.bf16 %v548_v21, %v547_v22  ;;  %v521_v26 = vpack.c.bf16 %v558_v23, %v557_v24 }
  0xa4   :  { %v561_v27 = vpop.permute.xlu0 %560  ;;  %v566_v28 = vpop.permute.xlu1 %565 }
  0xa5   :  { %513 = vmatpush3.bf16.msra.mxu1 %v512_v25  ;;  %v563_v29 = vunpack.i.h.bf16 %v561_v27  ;;  %v562_v30 = vunpack.i.l.bf16 %v561_v27  ;;  %v568_v31 = vunpack.i.h.bf16 %v566_v28  ;;  %v567_v32 = vunpack.i.l.bf16 %v566_v28 }
  0xa6   :  { %520 = vmatprep.subr.bf16.mxu1 %v645_v0 }
  0xa7   :  { %v518_v34 = vpack.c.bf16 %v563_v29, %v562_v30  ;;  %v524_v35 = vpack.c.bf16 %v568_v31, %v567_v32 }
  0xa8   :  { %478 = vmatmul.mubr.msk.f32.vlgmr.msra.gmra.mrb[0].mxu1 %vm48_vm1, %v125_v33 }
  0xa9   :  { %522 = vmatpush3.bf16.msra.mxu1 %v521_v26  ;;  %519 = vmatpush3.bf16.msra.mxu0 %v518_v34 }
  0xaa   :  { %523 = vmatprep.subr.bf16.mxu1 %v645_v0  ;;  %499 = vmatprep.mubr.msk.f32.mxu1 %vm646_vm0, %v647_v1 }
  0xac   :  { %489 = vmatmul.mubr.msk.f32.vlgmr.msra.gmra.mrb[2].mxu0 %vm48_vm1, %v222_v36 }
  0xad   :  { %525 = vmatpush3.bf16.msra.mxu1 %v524_v35 }
  0xb0   :  { %500 = vmatmul.mubr.msk.f32.vlgmr.msra.gmra.mrb[2].mxu1 %vm48_vm1, %v315_v37 }
 0x106   :  { %v118_v38 = vpop.f32.mrb[0].mxu0 }
 0x107   :  { %123 = vst.msk [vmem:[#allocation2] sm:$0xff] %vm122_vm2, %v118_v38  ;;  %v468_v39 = vpop.f32.mrb[1].mxu0 }
 0x17b   :  { %v211_v40 = vpop.f32.mrb[0].mxu1 }
 0x17c   :  { %v479_v41 = vpop.f32.mrb[1].mxu1  ;;  %216 = vrot.lane.b32.xlu0 %v211_v40, %s643_s23 }
 0x17f   :  { %v304_v42 = vpop.f32.mrb[2].mxu0 }
 0x180   :  { %v490_v43 = vpop.f32.mrb[3].mxu0  ;;  %309 = vrot.lane.b32.xlu1 %v304_v42, %s651_s12 }
 0x183   :  { %v397_v44 = vpop.f32.mrb[2].mxu1 }
 0x184   :  { %402 = vrot.lane.b32.xlu0 %v397_v44, %s652_s13  ;;  %v501_v45 = vpop.f32.mrb[3].mxu1 }
 0x1ee   :  { %v217_v46 = vpop.permute.xlu0 %216 }
 0x1ef   :  { %220 = vst.msk [vmem:[#allocation2] sm:$0xff] %vm219_vm3, %v217_v46 }
 0x1f2   :  { %v310_v48 = vpop.permute.xlu1 %309 }
 0x1f3   :  { %313 = vst.msk [vmem:[#allocation2] sm:$0xff] %vm312_vm4, %v310_v48 }
 0x1f6   :  { %v403_v51 = vpop.permute.xlu0 %402 }
 0x1f7   :  { %406 = vst.msk [vmem:[#allocation2] sm:$0xff] %vm405_vm5, %v403_v51 }
 0x1fe   :  { %v407_v55 = vld [vmem:[#allocation2] sm:$0xff] }
 0x1ff   :  { %v416_v56 = vadd.f32 %v414_v54, %v407_v55 }
 0x201   :  { %417 = vst.msk [vmem:[#allocation8] sm:$0xff] %vm48_vm1, %v416_v56 }
 0x202   :  { %624 = shalt.err (!%p621_p6)
}
 0x203   :  { %s625_s20 = scalar_lea.hbm %s740_s3, 128 }
 0x204   :  { %p626_p7 = scmp.ne.s32.totalorder %s740_s3, %s625_s20  ;;  %p629_p8 = scmp.lt.u32.totalorder %s625_s20, %s740_s3 }
 0x206   :  { %p631_p9 = pnand %p629_p8, %p626_p7 }
 0x208   :  { %634 = shalt.err (!%p631_p9)
}
 0x209   :  { %427 = dma.vmem_to_hbm [thread:$0]  %s425_s17, 128, %s740_s3, [#allocation5]  }
 0x20a   :  { %639 = dma.done.wait [#allocation5], 128  }
 0x20b   :  { %640 = vsyncadd [#allocation5], 4294967168 }
 0x20c   :  { %431 = vsyncpa [#allocation4], 1 }
 0x20d   :  { %432 = vsyncpa [#allocation7], 1 }
 0x20e   :  { %433 = vsyncpa [#allocation5], 1 }

</bundles_post_ra>
